<compile_context>
chip_gen: v7x
topology: tpu7x:2x2x1
jax: 0.10.0
libtpu: 0.0.40
codegen_flags: <defaults>
</compile_context>

<pallas_src>
import functools

import jax
import jax.numpy as jnp
from jax.experimental import pallas as pl
from jax.experimental.pallas import tpu as pltpu


# --------------------------------------------------------------------------
# helpers
# --------------------------------------------------------------------------
def _round_up(x, m):
    return (x + m - 1) // m * m


def _pad2d(x, shape):
    pr = shape[0] - x.shape[0]
    pc = shape[1] - x.shape[1]
    if pr == 0 and pc == 0:
        return x
    return jnp.pad(x, ((0, pr), (0, pc)))


# --------------------------------------------------------------------------
# Kernel 1: generic tiled matmul (graph propagation), bf16 operands, f32 acc
# --------------------------------------------------------------------------
def _matmul_kernel(a_ref, b_ref, o_ref, acc_ref):
    @pl.when(pl.program_id(2) == 0)
    def _init():
        acc_ref[...] = jnp.zeros_like(acc_ref)

    acc_ref[...] += jnp.dot(a_ref[...], b_ref[...],
                            preferred_element_type=jnp.float32)

    @pl.when(pl.program_id(2) == pl.num_programs(2) - 1)
    def _finalize():
        o_ref[...] = acc_ref[...].astype(o_ref.dtype)


def matmul_bf16(a, b, *, tm=256, tn=256, tk=512):
    """a @ b with bf16 MXU operands and f32 accumulation.

    Tile defaults target v6e/v7x (2x256x256 MXU); they shrink automatically
    for small problems.  On v5e, tm=tn=128 is equally good (128x128 MXU).
    """
    M, K = a.shape
    K2, N = b.shape
    assert K == K2
    tm = min(tm, _round_up(M, 8))
    tn = min(tn, _round_up(N, 128))
    tk = min(tk, _round_up(K, 128))
    Mp, Kp, Np = _round_up(M, tm), _round_up(K, tk), _round_up(N, tn)

    a_p = _pad2d(a, (Mp, Kp)).astype(jnp.bfloat16)
    b_p = _pad2d(b, (Kp, Np)).astype(jnp.bfloat16)

    out = pl.pallas_call(
        _matmul_kernel,
        out_shape=jax.ShapeDtypeStruct((Mp, Np), jnp.float32),
        grid_spec=pltpu.PrefetchScalarGridSpec(
            num_scalar_prefetch=0,
            grid=(Mp // tm, Np // tn, Kp // tk),
            in_specs=[pl.BlockSpec((tm, tk), lambda i, j, k: (i, k)),
                      pl.BlockSpec((tk, tn), lambda i, j, k: (k, j))],
            out_specs=pl.BlockSpec((tm, tn), lambda i, j, k: (i, j)),
            scratch_shapes=[pltpu.VMEM((tm, tn), jnp.float32)],
        ),
        compiler_params=pltpu.CompilerParams(
            dimension_semantics=("parallel", "parallel", "arbitrary")),
    )(a_p, b_p)
    return out[:M, :N]


# --------------------------------------------------------------------------
# Kernel 2: embedding lookup (non-graph forward) — scalar-prefetch row gather
# --------------------------------------------------------------------------
def _gather_kernel(ids_ref, table_ref, o_ref):
    del ids_ref  # consumed by the index_map only
    o_ref[...] = table_ref[...]


def embedding_lookup(table, ids):
    b = ids.shape[0]
    n_rows, d = table.shape
    ids = jnp.clip(ids.astype(jnp.int32), 0, n_rows - 1)
    return pl.pallas_call(
        _gather_kernel,
        out_shape=jax.ShapeDtypeStruct((b, d), table.dtype),
        grid_spec=pltpu.PrefetchScalarGridSpec(
            num_scalar_prefetch=1,
            grid=(b,),
            in_specs=[pl.BlockSpec((1, d), lambda i, idx: (idx[i], 0))],
            out_specs=pl.BlockSpec((1, d), lambda i, idx: (i, 0)),
        ),
        compiler_params=pltpu.CompilerParams(
            dimension_semantics=("arbitrary",)),
    )(ids, table)


# --------------------------------------------------------------------------
# Kernel 3: fused predict / predict_rating
#   one pallas_call: gather user row + item row via scalar-prefetch index_maps,
#   dot product, sigmoid, affine rescale, lane-dense (1,128) output per row.
# --------------------------------------------------------------------------
def _predict_kernel(lo, hi, uids_ref, iids_ref, u_ref, i_ref, o_ref):
    del uids_ref, iids_ref  # consumed by the index_maps only
    s = jnp.sum(u_ref[...].astype(jnp.float32) * i_ref[...].astype(jnp.float32),
                axis=-1, keepdims=True)
    p = jax.nn.sigmoid(s)
    val = lo + (hi - lo) * p                      # (1, 1)
    o_ref[...] = jnp.broadcast_to(val, o_ref.shape)


def predict_fused(user_table, item_table, user_ids, item_ids, lo, hi):
    b = user_ids.shape[0]
    n_u, d = user_table.shape
    n_i, _ = item_table.shape
    b_pad = _round_up(b, 8)

    uids = jnp.clip(user_ids.astype(jnp.int32), 0, n_u - 1)
    iids = jnp.clip(item_ids.astype(jnp.int32), 0, n_i - 1)
    uids = jnp.pad(uids, (0, b_pad - b))
    iids = jnp.pad(iids, (0, b_pad - b))

    out = pl.pallas_call(
        functools.partial(_predict_kernel, float(lo), float(hi)),
        out_shape=jax.ShapeDtypeStruct((b_pad, 128), jnp.float32),
        grid_spec=pltpu.PrefetchScalarGridSpec(
            num_scalar_prefetch=2,
            grid=(b_pad,),
            in_specs=[pl.BlockSpec((1, d), lambda i, u, it: (u[i], 0)),
                      pl.BlockSpec((1, d), lambda i, u, it: (it[i], 0))],
            out_specs=pl.BlockSpec((1, 128), lambda i, u, it: (i, 0)),
        ),
        compiler_params=pltpu.CompilerParams(
            dimension_semantics=("arbitrary",)),
    )(uids, iids, user_table, item_table)
    return out[:b, 0]


# --------------------------------------------------------------------------
# Kernel 4: full_sort_predict — item-tiled scores, no in-kernel transpose
# --------------------------------------------------------------------------
def _full_sort_kernel(u_ref, t_ref, o_ref):
    s = jax.lax.dot_general(u_ref[...], t_ref[...],
                            dimension_numbers=(((1,), (1,)), ((), ())),
                            preferred_element_type=jnp.float32)
    o_ref[...] = jax.nn.sigmoid(s)


def full_sort_scores(u_emb, item_table, *, tn=256):
    b, d = u_emb.shape
    n_items, _ = item_table.shape
    b_pad = _round_up(b, 8)
    d_pad = _round_up(d, 128)
    tn = min(tn, _round_up(n_items, 128))
    n_pad = _round_up(n_items, tn)

    u = _pad2d(u_emb, (b_pad, d_pad)).astype(jnp.bfloat16)
    t = _pad2d(item_table, (n_pad, d_pad)).astype(jnp.bfloat16)

    out = pl.pallas_call(
        _full_sort_kernel,
        out_shape=jax.ShapeDtypeStruct((b_pad, n_pad), jnp.float32),
        grid_spec=pltpu.PrefetchScalarGridSpec(
            num_scalar_prefetch=0,
            grid=(n_pad // tn,),
            in_specs=[pl.BlockSpec((b_pad, d_pad), lambda j: (0, 0)),
                      pl.BlockSpec((tn, d_pad), lambda j: (j, 0))],
            out_specs=pl.BlockSpec((b_pad, tn), lambda j: (0, j)),
        ),
        compiler_params=pltpu.CompilerParams(
            dimension_semantics=("parallel",)),
    )(u, t)
    return out[:b, :n_items]


# --------------------------------------------------------------------------
# Module-equivalent wrapper (deterministic, in-script parameter init)
# --------------------------------------------------------------------------
class AbstractRecommenderPallas:
    def __init__(self, n_users, n_items, emb_dim, rating_min, rating_max, key):
        self.n_users = n_users
        self.n_items = n_items
        self.train_rating_min = float(rating_min)
        self.train_rating_max = float(rating_max)

        # embedding dim padded to a multiple of 128 so every kernel is
        # lane-dense (the demo already uses 128, so this is a no-op there)
        self.emb_dim = _round_up(emb_dim, 128)

        k_u, k_i, k_adj = jax.random.split(key, 3)
        self.user_embedding = 0.1 * jax.random.normal(
            k_u, (n_users, self.emb_dim), dtype=jnp.float32)
        self.item_embedding = 0.1 * jax.random.normal(
            k_i, (n_items, self.emb_dim), dtype=jnp.float32)

        # deterministic binary interactions -> symmetrically normalized
        # bipartite interaction matrix (only the off-diagonal blocks of the
        # full (n,n) adjacency are nonzero, so we store them rectangularly)
        inter = (jax.random.uniform(k_adj, (n_users, n_items)) < 0.3)
        inter = inter.astype(jnp.float32)
        du = jnp.maximum(inter.sum(axis=1), 1.0)
        di = jnp.maximum(inter.sum(axis=0), 1.0)
        self.norm_inter = inter / jnp.sqrt(du)[:, None] / jnp.sqrt(di)[None, :]
        self.norm_inter_t = self.norm_inter.T  # precomputed once (no per-call transpose)

    # graph-type forward: propagate all embeddings through the interaction
    # matrix.  Equivalent to norm_adj @ concat(user_emb, item_emb) since the
    # diagonal blocks of norm_adj are zero.
    def forward_graph(self):
        new_user = matmul_bf16(self.norm_inter, self.item_embedding)
        new_item = matmul_bf16(self.norm_inter_t, self.user_embedding)
        return jnp.concatenate([new_user, new_item], axis=0)

    # non-graph forward: embedding lookup of input user / item ids
    def forward_lookup(self, bat_users, bat_items):
        u_emb = embedding_lookup(self.user_embedding, bat_users)
        i_emb = embedding_lookup(self.item_embedding, bat_items)
        return u_emb, i_emb

    def predict(self, bat_users, bat_items):
        return predict_fused(self.user_embedding, self.item_embedding,
                             bat_users, bat_items, 0.0, 1.0)

    def predict_rating(self, bat_users, bat_items):
        return predict_fused(self.user_embedding, self.item_embedding,
                             bat_users, bat_items,
                             self.train_rating_min, self.train_rating_max)

    def full_sort_predict(self, bat_users):
        u_emb = embedding_lookup(self.user_embedding, bat_users)
        return full_sort_scores(u_emb, self.item_embedding)

    # TODO(synk): caculate_rating_loss / caculate_ranking_loss are training
    # losses left abstract in the PyTorch module; not part of the forward pass.


if __name__ == "__main__":
    key = jax.random.PRNGKey(0)
    n_users, n_items, emb_dim, batch = 48, 80, 128, 8

    model = AbstractRecommenderPallas(n_users, n_items, emb_dim,
                                      rating_min=1.0, rating_max=5.0, key=key)

    k_u, k_i = jax.random.split(jax.random.PRNGKey(1))
    bat_users = jax.random.randint(k_u, (batch,), 0, n_users, dtype=jnp.int32)
    bat_items = jax.random.randint(k_i, (batch,), 0, n_items, dtype=jnp.int32)

    # graph-type forward
    new_emb = model.forward_graph()
    # non-graph forward (embedding lookup)
    u_emb, i_emb = model.forward_lookup(bat_users, bat_items)
    # prediction heads
    scores = model.predict(bat_users, bat_items)
    ratings = model.predict_rating(bat_users, bat_items)
    full_scores = model.full_sort_predict(bat_users)

    jax.block_until_ready((new_emb, u_emb, i_emb, scores, ratings, full_scores))

    # lightweight correctness checks against plain-JAX references
    all_emb = jnp.concatenate([model.user_embedding, model.item_embedding], 0)
    n_nodes = n_users + n_items
    norm_adj = jnp.zeros((n_nodes, n_nodes), dtype=jnp.float32)
    norm_adj = norm_adj.at[:n_users, n_users:].set(model.norm_inter)
    norm_adj = norm_adj.at[n_users:, :n_users].set(model.norm_inter.T)
    ref_new_emb = norm_adj @ all_emb

    ref_u = jnp.take(model.user_embedding, bat_users, axis=0)
    ref_i = jnp.take(model.item_embedding, bat_items, axis=0)
    ref_scores = jax.nn.sigmoid(jnp.sum(ref_u * ref_i, axis=-1))
    ref_ratings = 1.0 + 4.0 * ref_scores
    ref_full = jax.nn.sigmoid(ref_u @ model.item_embedding.T)

    # bf16-operand matmuls compared against f32 references -> looser tolerance
    assert jnp.allclose(new_emb, ref_new_emb, atol=5e-3)
    assert jnp.allclose(u_emb, ref_u, atol=1e-6)
    assert jnp.allclose(i_emb, ref_i, atol=1e-6)
    assert jnp.allclose(scores, ref_scores, atol=1e-5)
    assert jnp.allclose(ratings, ref_ratings, atol=1e-4)
    assert jnp.allclose(full_scores, ref_full, atol=5e-3)

    print("KERNEL_OK")
</pallas_src>

<mosaic_0001>
module attributes {stable_mosaic.version = 11 : i64} {
  func.func @_matmul_kernel(%arg0: i32, %arg1: i32, %arg2: i32, %arg3: memref<48x128xbf16, #tpu.memory_space<vmem>>, %arg4: memref<128x128xbf16, #tpu.memory_space<vmem>>, %arg5: memref<48x128xf32, #tpu.memory_space<vmem>>, %arg6: memref<48x128xf32, #tpu.memory_space<vmem>>) attributes {dimension_semantics = [#tpu.dimension_semantics<parallel>, #tpu.dimension_semantics<parallel>, #tpu.dimension_semantics<arbitrary>], iteration_bounds = array<i64: 1, 1, 1>, scalar_prefetch = 0 : i64, scratch_operands = 1 : i64, tpu.core_type = #tpu.core_type<tc>, window_params = [{transform_indices = @transform_0, window_bounds = array<i64: 48, 128>}, {transform_indices = @transform_1, window_bounds = array<i64: 128, 128>}, {transform_indices = @transform_2, window_bounds = array<i64: 48, 128>}]} {
    %c0_i32 = arith.constant 0 : i32
    %0 = arith.cmpi eq, %arg2, %c0_i32 : i32
    %1 = arith.extui %0 : i1 to i32
    %c0_i32_0 = arith.constant 0 : i32
    %2 = arith.cmpi ne, %1, %c0_i32_0 : i32
    scf.if %2 {
      %cst_10 = arith.constant 0.000000e+00 : f32
      %12 = vector.broadcast %cst_10 : f32 to vector<48x128xf32>
      %c0_11 = arith.constant 0 : index
      %c0_12 = arith.constant 0 : index
      %13 = vector.load %arg6[%c0_11, %c0_12] : memref<48x128xf32, #tpu.memory_space<vmem>>, vector<48x128xf32>
      tpu.vector_store %arg6[%c0_11, %c0_12], %12 {strides = array<i32>} : memref<48x128xf32, #tpu.memory_space<vmem>>, vector<48x128xf32>,
    } else {
    }
    %c0 = arith.constant 0 : index
    %c0_1 = arith.constant 0 : index
    %3 = vector.load %arg6[%c0, %c0_1] : memref<48x128xf32, #tpu.memory_space<vmem>>, vector<48x128xf32>
    %c0_2 = arith.constant 0 : index
    %c0_3 = arith.constant 0 : index
    %4 = vector.load %arg3[%c0_2, %c0_3] : memref<48x128xbf16, #tpu.memory_space<vmem>>, vector<48x128xbf16>
    %c0_4 = arith.constant 0 : index
    %c0_5 = arith.constant 0 : index
    %5 = vector.load %arg4[%c0_4, %c0_5] : memref<128x128xbf16, #tpu.memory_space<vmem>>, vector<128x128xbf16>
    %cst = arith.constant dense<0.000000e+00> : vector<48x128xf32>
    %6 = tpu.matmul %4, %5, %cst {dimension_numbers = #tpu.dot_dimension_numbers<[1], [0], [0], [1], [0, 0, 1, 1], [], []>} : vector<48x128xbf16>, vector<128x128xbf16>, vector<48x128xf32> -> vector<48x128xf32>
    %7 = arith.addf %3, %6 : vector<48x128xf32>
    %c0_6 = arith.constant 0 : index
    %c0_7 = arith.constant 0 : index
    %8 = vector.load %arg6[%c0_6, %c0_7] : memref<48x128xf32, #tpu.memory_space<vmem>>, vector<48x128xf32>
    tpu.vector_store %arg6[%c0_6, %c0_7], %7 {strides = array<i32>} : memref<48x128xf32, #tpu.memory_space<vmem>>, vector<48x128xf32>,
    %c0_i32_8 = arith.constant 0 : i32
    %9 = arith.cmpi eq, %arg2, %c0_i32_8 : i32
    %10 = arith.extui %9 : i1 to i32
    %c0_i32_9 = arith.constant 0 : i32
    %11 = arith.cmpi ne, %10, %c0_i32_9 : i32
    scf.if %11 {
      %c0_10 = arith.constant 0 : index
      %c0_11 = arith.constant 0 : index
      %12 = vector.load %arg6[%c0_10, %c0_11] : memref<48x128xf32, #tpu.memory_space<vmem>>, vector<48x128xf32>
      %c0_12 = arith.constant 0 : index
      %c0_13 = arith.constant 0 : index
      %13 = vector.load %arg5[%c0_12, %c0_13] : memref<48x128xf32, #tpu.memory_space<vmem>>, vector<48x128xf32>
      tpu.vector_store %arg5[%c0_12, %c0_13], %12 {strides = array<i32>} : memref<48x128xf32, #tpu.memory_space<vmem>>, vector<48x128xf32>,
    } else {
    }
    return
  }
  func.func @transform_0(%arg0: i32, %arg1: i32, %arg2: i32) -> (i32, i32) {
    %c0_i32 = arith.constant 0 : i32
    return %arg0, %arg2 : i32, i32
  }
  func.func @transform_1(%arg0: i32, %arg1: i32, %arg2: i32) -> (i32, i32) {
    %c0_i32 = arith.constant 0 : i32
    return %arg2, %arg1 : i32, i32
  }
  func.func @transform_2(%arg0: i32, %arg1: i32, %arg2: i32) -> (i32, i32) {
    %c0_i32 = arith.constant 0 : i32
    return %arg0, %arg1 : i32, i32
  }
}

</mosaic_0001>

<bundles_post_ra>
// kernel: tpu_custom_call.1
= control target key start
LH: loop header
LB: loop body
LE: loop exit
PB: predicated region body
PF: predicated region fallthrough
CT: control target
= control target key end

     0   :  { %7 = vsyncpa [#allocation4], 0  ;;  %s468_s0 = inlined_call_operand.hbm [shape: bf16[48,128], index: 0, kind: input, shape index: {}]   ;;  %s469_s1 = inlined_call_operand.hbm [shape: bf16[128,128], index: 1, kind: input, shape index: {}]   ;;  %s470_s2 = inlined_call_operand.hbm [shape: f32[48,128], index: 2, kind: output, shape index: {}]  }
   0x1   :  { %8 = vsyncpa [#allocation7], 0 }
   0x2   :  { %9 = vsyncpa [#allocation5], 0  ;;  %s405_s9 = smov [#allocation3]   ;;  %s333_s13 = scalar_lea.hbm %s468_s0, 384 }
   0x3   :  { %s15_s10 = sshll.u32 %s405_s9, 4  ;;  %p334_p0 = scmp.ne.s32.totalorder %s468_s0, %s333_s13  ;;  %s16_s10 = int_to_ptr.vmem [resolvable:$true] %s15_s10 }
   0x4   :  { %p337_p1 = scmp.lt.u32.totalorder %s333_s13, %s468_s0 }
   0x6   :  { %p339_p2 = pnand %p337_p1, %p334_p0 }
   0x8   :  { %342 = shalt.err (!%p339_p2)
}
   0x9   :  { %s343_s18 = scalar_lea.vmem %s16_s10, 384  ;;  %p348_p4 = scmp.lt.s32.totalorder %s16_s10, %s16_s10 }
   0xa   :  { %p344_p3 = scmp.ne.s32.totalorder %s16_s10, %s343_s18  ;;  %p349_p5 = scmp.lt.s32.totalorder %s343_s18, %s343_s18 }
   0xc   :  { %p350_p6 = por %p349_p5, %p348_p4 }
   0xe   :  { %p351_p7 = pnand %p350_p6, %p344_p3 }
  0x10   :  { %354 = shalt.err (!%p351_p7)
}
  0x11   :  { %s406_s19 = smov 64   ;;  %s407_s20 = smov 4  }
  0x12   :  { %21 = dma.hbm_to_vmem [thread:$0]  %s468_s0, 384, %s16_s10, [#allocation4], %s406_s19, %s406_s19, %s407_s20  }
  0x13   :  { %s408_s23 = smov [#allocation6]   ;;  %s355_s27 = scalar_lea.hbm %s469_s1, 1024 }
  0x14   :  { %s27_s24 = sshll.u32 %s408_s23, 4  ;;  %p356_p8 = scmp.ne.s32.totalorder %s469_s1, %s355_s27  ;;  %s28_s24 = int_to_ptr.vmem [resolvable:$true] %s27_s24 }
  0x15   :  { %p359_p9 = scmp.lt.u32.totalorder %s355_s27, %s469_s1 }
  0x17   :  { %p361_p10 = pnand %p359_p9, %p356_p8 }
  0x19   :  { %364 = shalt.err (!%p361_p10)
}
  0x1a   :  { %s365_s4 = scalar_lea.vmem %s28_s24, 1024  ;;  %p370_p12 = scmp.lt.s32.totalorder %s28_s24, %s28_s24 }
  0x1b   :  { %p366_p11 = scmp.ne.s32.totalorder %s28_s24, %s365_s4  ;;  %p371_p13 = scmp.lt.s32.totalorder %s365_s4, %s365_s4 }
  0x1d   :  { %p372_p0 = por %p371_p13, %p370_p12 }
  0x1f   :  { %p373_p1 = pnand %p372_p0, %p366_p11 }
  0x21   :  { %376 = shalt.err (!%p373_p1)
}
  0x22   :  { %33 = dma.hbm_to_vmem [thread:$0]  %s469_s1, 1024, %s28_s24, [#allocation7], %s406_s19, %s406_s19, %s407_s20  }
  0x23   :  { %399 = dma.done.wait [#allocation4], 384  }
  0x24   :  { %400 = vsyncadd [#allocation4], 4294966912 }
  0x25   :  { %401 = dma.done.wait [#allocation7], 1024  }
  0x26   :  { %402 = vsyncadd [#allocation7], 4294966272  ;;  %v409_v0 = vmov 0.0   ;;  %vm410_vm0 = vmmov 0   ;;  %v322_v1 = vld [vmem:[#allocation6] sm:$0xff]   ;;  %v323_v2 = vld [vmem:[#allocation6 + $0x8] sm:$0xff]  }
  0x27   :  { %297 = vmatprep.subr.bf16.mxu1 %v409_v0  ;;  %269 = vmatprep.subr.bf16.mxu0 %v409_v0  ;;  %v324_v3 = vld [vmem:[#allocation6 + $0x10] sm:$0xff]   ;;  %v325_v4 = vld [vmem:[#allocation6 + $0x18] sm:$0xff]   ;;  %v326_v5 = vld [vmem:[#allocation6 + $0x20] sm:$0xff]   ;;  %s411_s1 = smov [#allocation8]  }
  0x28   :  { %289 = vmatprep.mubr.msk.bf16.mxu1 %vm410_vm0, %v409_v0  ;;  %285 = vmatprep.mubr.msk.bf16.mxu0 %vm410_vm0, %v409_v0  ;;  %v327_v6 = vld [vmem:[#allocation6 + $0x28] sm:$0xff]   ;;  %v328_v7 = vld [vmem:[#allocation6 + $0x30] sm:$0xff]   ;;  %v329_v8 = vld [vmem:[#allocation6 + $0x38] sm:$0xff]   ;;  %s234_s6 = sshll.u32 %s411_s1, 4  ;;  %s235_s6 = int_to_ptr.vmem [resolvable:$true] %s234_s6 }
  0x29   :  { %305 = vmatpush3.bf16.msra.mxu1 %v322_v1  ;;  %270 = vmatpush3.bf16.msra.mxu0 %v322_v1  ;;  %v330_v9 = vld [vmem:[#allocation3 + $0x8] sm:$0xff]   ;;  %v331_v10 = vld [vmem:[#allocation3] sm:$0xff]   ;;  %v332_v11 = vld [vmem:[#allocation3 + $0x10] sm:$0xff]   ;;  %s377_s7 = scalar_lea.vmem %s235_s6, 768  ;;  %p382_p3 = scmp.lt.s32.totalorder %s235_s6, %s235_s6 }
  0x2a   :  { %298 = vmatprep.subr.bf16.mxu1 %v409_v0  ;;  %271 = vmatprep.subr.bf16.mxu0 %v409_v0  ;;  %p378_p2 = scmp.ne.s32.totalorder %s235_s6, %s377_s7  ;;  %p383_p4 = scmp.lt.s32.totalorder %s377_s7, %s377_s7 }
  0x2c   :  { %p384_p5 = por %p383_p4, %p382_p3 }
  0x2d   :  { %306 = vmatpush3.bf16.msra.mxu1 %v323_v2  ;;  %272 = vmatpush3.bf16.msra.mxu0 %v323_v2 }
  0x2e   :  { %299 = vmatprep.subr.bf16.mxu1 %v409_v0  ;;  %273 = vmatprep.subr.bf16.mxu0 %v409_v0  ;;  %p385_p6 = pnand %p384_p5, %p378_p2 }
  0x31   :  { %307 = vmatpush3.bf16.msra.mxu1 %v324_v3  ;;  %274 = vmatpush3.bf16.msra.mxu0 %v324_v3 }
  0x32   :  { %300 = vmatprep.subr.bf16.mxu1 %v409_v0  ;;  %275 = vmatprep.subr.bf16.mxu0 %v409_v0 }
  0x35   :  { %308 = vmatpush3.bf16.msra.mxu1 %v325_v4  ;;  %276 = vmatpush3.bf16.msra.mxu0 %v325_v4 }
  0x36   :  { %301 = vmatprep.subr.bf16.mxu1 %v409_v0  ;;  %277 = vmatprep.subr.bf16.mxu0 %v409_v0 }
  0x39   :  { %309 = vmatpush3.bf16.msra.mxu1 %v326_v5  ;;  %278 = vmatpush3.bf16.msra.mxu0 %v326_v5 }
  0x3a   :  { %302 = vmatprep.subr.bf16.mxu1 %v409_v0  ;;  %279 = vmatprep.subr.bf16.mxu0 %v409_v0 }
  0x3d   :  { %310 = vmatpush3.bf16.msra.mxu1 %v327_v6  ;;  %280 = vmatpush3.bf16.msra.mxu0 %v327_v6 }
  0x3e   :  { %303 = vmatprep.subr.bf16.mxu1 %v409_v0  ;;  %281 = vmatprep.subr.bf16.mxu0 %v409_v0 }
  0x41   :  { %311 = vmatpush3.bf16.msra.mxu1 %v328_v7  ;;  %282 = vmatpush3.bf16.msra.mxu0 %v328_v7 }
  0x42   :  { %304 = vmatprep.subr.bf16.mxu1 %v409_v0  ;;  %283 = vmatprep.subr.bf16.mxu0 %v409_v0 }
  0x45   :  { %312 = vmatpush3.bf16.msra.mxu1 %v329_v8  ;;  %284 = vmatpush3.bf16.msra.mxu0 %v329_v8 }
  0x48   :  { %290 = vmatmul.mubr.bf16.vlgmr.msra.gmra.mrb[0].mxu1 %v330_v9  ;;  %286 = vmatmul.mubr.bf16.vlgmr.msra.gmra.mrb[0].mxu0 %v331_v10 }
  0x49   :  { %293 = vmatprep.mubr.msk.bf16.mxu1 %vm410_vm0, %v409_v0 }
  0x50   :  { %294 = vmatmul.mubr.bf16.gmra.mrb[4].mxu1 %v332_v11 }
 0x11b   :  { %v187_v12 = vpop.f32.mrb[0].mxu1  ;;  %v179_v13 = vpop.f32.mrb[0].mxu0 }
 0x11c   :  { %225 = vst [vmem:[#allocation8 + $0x10] sm:$0xff] %v187_v12  ;;  %v291_v14 = vpop.f32.mrb[1].mxu1  ;;  %223 = vst [vmem:[#allocation8] sm:$0xff] %v179_v13  ;;  %v287_v15 = vpop.f32.mrb[1].mxu0 }
 0x11d   :  { %v190_v16 = vpop.f32.mrb[2].mxu1  ;;  %v182_v17 = vpop.f32.mrb[2].mxu0 }
 0x11e   :  { %226 = vst [vmem:[#allocation8 + $0x18] sm:$0xff] %v190_v16  ;;  %v292_v18 = vpop.f32.mrb[3].mxu1  ;;  %224 = vst [vmem:[#allocation8 + $0x8] sm:$0xff] %v182_v17  ;;  %v288_v19 = vpop.f32.mrb[3].mxu0 }
 0x123   :  { %v195_v20 = vpop.f32.mrb[4].mxu1 }
 0x124   :  { %227 = vst [vmem:[#allocation8 + $0x20] sm:$0xff] %v195_v20  ;;  %v295_v21 = vpop.f32.mrb[5].mxu1 }
 0x125   :  { %v198_v22 = vpop.f32.mrb[6].mxu1 }
 0x126   :  { %228 = vst [vmem:[#allocation8 + $0x28] sm:$0xff] %v198_v22  ;;  %v296_v23 = vpop.f32.mrb[7].mxu1 }
 0x127   :  { %388 = shalt.err (!%p385_p6)
}
 0x128   :  { %s389_s10 = scalar_lea.hbm %s470_s2, 768 }
 0x129   :  { %p390_p7 = scmp.ne.s32.totalorder %s470_s2, %s389_s10  ;;  %p393_p8 = scmp.lt.u32.totalorder %s389_s10, %s470_s2 }
 0x12b   :  { %p395_p9 = pnand %p393_p8, %p390_p7 }
 0x12d   :  { %398 = shalt.err (!%p395_p9)
}
 0x12e   :  { %s412_s15 = smov 128   ;;  %s413_s16 = smov 8  }
 0x12f   :  { %240 = dma.vmem_to_hbm [thread:$0]  %s235_s6, 768, %s470_s2, [#allocation5], %s412_s15, %s412_s15, %s413_s16  }
 0x130   :  { %403 = dma.done.wait [#allocation5], 768  }
 0x131   :  { %404 = vsyncadd [#allocation5], 4294966528 }
 0x132   :  { %244 = vsyncpa [#allocation4], 1 }
 0x133   :  { %245 = vsyncpa [#allocation7], 1 }
 0x134   :  { %246 = vsyncpa [#allocation5], 1 }

</bundles_post_ra>
